<compile_context>
chip_gen: v7x
topology: tpu7x:2x2x1
jax: 0.10.0
libtpu: 0.0.40
codegen_flags: <defaults>
</compile_context>

<pallas_src>
import math
from itertools import permutations

import numpy as np
import jax
import jax.numpy as jnp
from jax.experimental import pallas as pl
from jax.experimental.pallas import tpu as pltpu

_PI = math.pi
_INV_PI = 1.0 / math.pi


def _make_rmspe_kernel(m):
    """Per-tile kernel. pred/targ tiles are (M, B_TILE) slabs, batch on lanes."""
    inv_m = 1.0 / m

    def kernel(sel_ref, pred_ref, targ_ref, out_ref):
        pred = pred_ref[...]                                   # (M, Bt) f32
        targ = targ_ref[...]                                   # (M, Bt) f32

        # Pairwise differences flattened to a lane-dense (M*M, Bt) slab:
        #   row k = pred[k // M] - targ[k % M]
        diff = (pred[:, None, :] - targ[None, :, :]).reshape(m * m, pred.shape[-1])

        # Wrapped error in [-pi/2, pi/2):  d - pi * floor(d/pi + 1/2)
        # (same as (d + pi/2) mod pi - pi/2, with the +-pi/2 folded into the round).
        err = diff - _PI * jnp.floor(diff * _INV_PI + 0.5)
        err2 = err * err                                       # (M*M, Bt)

        # All M! permutation sums in one MXU contraction with the static 0/1
        # selector; min over permutations is a sublane (XLU) reduction.
        sums = jnp.dot(sel_ref[...], err2,
                       preferred_element_type=jnp.float32)     # (P, Bt)
        best = jnp.min(sums, axis=0, keepdims=True)            # (1, Bt)

        # sqrt and 1/M hoisted out of the permutation path (monotone under min).
        out_ref[...] = jnp.sqrt(best * inv_m)                  # per-sample rmspe

    return kernel


def rmspe_loss(doa_predictions: jnp.ndarray, doa: jnp.ndarray, *, b_tile: int = 2048):
    """doa_predictions: (B, M), doa: (B, M), radians, any float dtype."""
    B, M = doa_predictions.shape
    assert doa.shape == (B, M)

    perms = tuple(permutations(range(M)))
    n_perm = len(perms)
    mm = M * M

    # Static 0/1 permutation selector: sums[p] = sum_j err2[perm_p[j]*M + j].
    # Kept in f32 (v7x MXU has no integer path).
    sel = np.zeros((n_perm, mm), np.float32)
    for p_idx, perm in enumerate(perms):
        for j in range(M):
            sel[p_idx, perm[j] * M + j] = 1.0

    # Lane-dense batch tiling: round the tile to a multiple of 128, cap it so the
    # grid has >= 2 tiles when the batch allows it (keeps both v7x TensorCores
    # busy; negligible extra grid overhead on single-TC v5e/v6e).
    b_blocks = pl.cdiv(B, 128)
    tile_blocks = max(1, pl.cdiv(int(b_tile), 128))
    if b_blocks >= 2:
        tile_blocks = min(tile_blocks, pl.cdiv(b_blocks, 2))
    tile_blocks = min(tile_blocks, b_blocks)
    b_tile = tile_blocks * 128
    n_tiles = pl.cdiv(B, b_tile)
    b_pad = n_tiles * b_tile

    # Batch on the lane (last) axis.  No explicit zero-padded copy: partial
    # last blocks are read padded by Pallas and the garbage lanes are dropped
    # by the [:B] slice below, so kernel HBM traffic is exactly 2*M*B*4 bytes.
    pred_t = doa_predictions.astype(jnp.float32).T             # (M, B)
    targ_t = doa.astype(jnp.float32).T                         # (M, B)

    per_sample = pl.pallas_call(
        _make_rmspe_kernel(M),
        out_shape=jax.ShapeDtypeStruct((1, b_pad), jnp.float32),
        grid=(n_tiles,),
        in_specs=[
            pl.BlockSpec((n_perm, mm), lambda i: (0, 0)),      # selector (resident)
            pl.BlockSpec((M, b_tile), lambda i: (0, i)),       # predictions tile
            pl.BlockSpec((M, b_tile), lambda i: (0, i)),       # targets tile
        ],
        out_specs=pl.BlockSpec((1, b_tile), lambda i: (0, i)),
        compiler_params=pltpu.CompilerParams(
            dimension_semantics=("parallel",),
            vmem_limit_bytes=32 * 1024 * 1024,
        ),
    )(jnp.asarray(sel), pred_t, targ_t)

    # Final mean over the real (unpadded) batch entries in the wrapper.
    return jnp.mean(per_sample[0, :B])


def _rmspe_loss_ref(doa_predictions, doa):
    """Pure-JAX reference mirroring the PyTorch forward."""
    B, M = doa_predictions.shape
    perm_idx = jnp.asarray(list(permutations(range(M))), dtype=jnp.int32)
    preds_perm = doa_predictions[:, perm_idx]                       # (B, P, M)
    err = jnp.mod(preds_perm - doa[:, None, :] + _PI / 2.0, _PI) - _PI / 2.0
    rmspe = jnp.sqrt(jnp.sum(err * err, axis=-1)) / jnp.sqrt(M)
    return jnp.mean(jnp.min(rmspe, axis=-1))


if __name__ == "__main__":
    key = jax.random.PRNGKey(0)
    k1, k2, k3, k4, k5, k6 = jax.random.split(key, 6)

    # Small case consistent with the module: batch of 2 samples, 3 DOA sources.
    B, M = 2, 3
    preds = jax.random.uniform(k1, (B, M), jnp.float32, minval=-_PI, maxval=_PI)
    targs = jax.random.uniform(k2, (B, M), jnp.float32, minval=-_PI, maxval=_PI)

    loss = rmspe_loss(preds, targs)
    jax.block_until_ready(loss)
    ref = _rmspe_loss_ref(preds, targs)
    assert jnp.allclose(loss, ref, atol=1e-5, rtol=1e-5), (loss, ref)

    # Ragged, multi-tile grid (260 samples, 4 sources, partial last block).
    B2, M2 = 260, 4
    preds2 = jax.random.uniform(k3, (B2, M2), jnp.float32, minval=-_PI, maxval=_PI)
    targs2 = jax.random.uniform(k4, (B2, M2), jnp.float32, minval=-_PI, maxval=_PI)

    loss2 = rmspe_loss(preds2, targs2, b_tile=128)
    jax.block_until_ready(loss2)
    ref2 = _rmspe_loss_ref(preds2, targs2)
    assert jnp.allclose(loss2, ref2, atol=1e-5, rtol=1e-5), (loss2, ref2)

    # Larger batch exercising the default (large-tile, >=2 tile) fast path.
    B3, M3 = 1536, 4
    preds3 = jax.random.uniform(k5, (B3, M3), jnp.float32, minval=-_PI, maxval=_PI)
    targs3 = jax.random.uniform(k6, (B3, M3), jnp.float32, minval=-_PI, maxval=_PI)

    loss3 = rmspe_loss(preds3, targs3)
    jax.block_until_ready(loss3)
    ref3 = _rmspe_loss_ref(preds3, targs3)
    assert jnp.allclose(loss3, ref3, atol=1e-5, rtol=1e-5), (loss3, ref3)

    print("KERNEL_OK")
</pallas_src>

<mosaic_0001>
module attributes {stable_mosaic.version = 11 : i64} {
  func.func @kernel(%arg0: i32, %arg1: memref<6x9xf32, #tpu.memory_space<vmem>>, %arg2: memref<3x128xf32, #tpu.memory_space<vmem>>, %arg3: memref<3x128xf32, #tpu.memory_space<vmem>>, %arg4: memref<1x128xf32, #tpu.memory_space<vmem>>) attributes {dimension_semantics = [#tpu.dimension_semantics<parallel>], iteration_bounds = array<i64: 1>, scalar_prefetch = 0 : i64, scratch_operands = 0 : i64, tpu.core_type = #tpu.core_type<tc>, window_params = [{pipeline_mode = #tpu.pipeline_mode<synchronous>, transform_indices = @transform_0, window_bounds = array<i64: 6, 9>}, {transform_indices = @transform_1, window_bounds = array<i64: 3, 128>}, {transform_indices = @transform_2, window_bounds = array<i64: 3, 128>}, {transform_indices = @transform_3, window_bounds = array<i64: 1, 128>}]} {
    %c0 = arith.constant 0 : index
    %c0_0 = arith.constant 0 : index
    %0 = vector.load %arg2[%c0, %c0_0] : memref<3x128xf32, #tpu.memory_space<vmem>>, vector<3x128xf32>
    %c0_1 = arith.constant 0 : index
    %c0_2 = arith.constant 0 : index
    %1 = vector.load %arg3[%c0_1, %c0_2] : memref<3x128xf32, #tpu.memory_space<vmem>>, vector<3x128xf32>
    %2 = vector.shape_cast %0 : vector<3x128xf32> to vector<3x1x128xf32>
    %3 = vector.shape_cast %1 : vector<3x128xf32> to vector<1x3x128xf32>
    %4 = vector.broadcast %2 : vector<3x1x128xf32> to vector<3x3x128xf32>
    %5 = vector.broadcast %3 : vector<1x3x128xf32> to vector<3x3x128xf32>
    %6 = arith.subf %4, %5 : vector<3x3x128xf32>
    %7 = vector.shape_cast %6 : vector<3x3x128xf32> to vector<9x128xf32>
    %cst = arith.constant 0.318309873 : f32
    %8 = vector.broadcast %cst : f32 to vector<9x128xf32>
    %9 = arith.mulf %7, %8 : vector<9x128xf32>
    %cst_3 = arith.constant 5.000000e-01 : f32
    %10 = vector.broadcast %cst_3 : f32 to vector<9x128xf32>
    %11 = arith.addf %9, %10 : vector<9x128xf32>
    %12 = math.floor %11 : vector<9x128xf32>
    %cst_4 = arith.constant 3.14159274 : f32
    %13 = vector.broadcast %cst_4 : f32 to vector<9x128xf32>
    %14 = arith.mulf %13, %12 : vector<9x128xf32>
    %15 = arith.subf %7, %14 : vector<9x128xf32>
    %16 = arith.mulf %15, %15 : vector<9x128xf32>
    %c0_5 = arith.constant 0 : index
    %c0_6 = arith.constant 0 : index
    %17 = vector.load %arg1[%c0_5, %c0_6] : memref<6x9xf32, #tpu.memory_space<vmem>>, vector<6x9xf32>
    %cst_7 = arith.constant dense<0.000000e+00> : vector<6x128xf32>
    %18 = tpu.matmul %17, %16, %cst_7 {dimension_numbers = #tpu.dot_dimension_numbers<[1], [0], [0], [1], [0, 0, 1, 1], [], []>} : vector<6x9xf32>, vector<9x128xf32>, vector<6x128xf32> -> vector<6x128xf32>
    %cst_8 = arith.constant dense<0x7F800000> : vector<128xf32>
    %19 = vector.multi_reduction <minimumf>, %18, %cst_8 [0] : vector<6x128xf32> to vector<128xf32>
    %20 = vector.shape_cast %19 : vector<128xf32> to vector<1x128xf32>
    %cst_9 = arith.constant 0.333333343 : f32
    %21 = vector.broadcast %cst_9 : f32 to vector<1x128xf32>
    %22 = arith.mulf %20, %21 : vector<1x128xf32>
    %23 = math.sqrt %22 : vector<1x128xf32>
    %c0_10 = arith.constant 0 : index
    %c0_11 = arith.constant 0 : index
    %24 = vector.load %arg4[%c0_10, %c0_11] : memref<1x128xf32, #tpu.memory_space<vmem>>, vector<1x128xf32>
    tpu.vector_store %arg4[%c0_10, %c0_11], %23 {strides = array<i32>} : memref<1x128xf32, #tpu.memory_space<vmem>>, vector<1x128xf32>,
    return
  }
  func.func @transform_0(%arg0: i32) -> (i32, i32) {
    %c0_i32 = arith.constant 0 : i32
    %c0_i32_0 = arith.constant 0 : i32
    %c0_i32_1 = arith.constant 0 : i32
    return %c0_i32, %c0_i32_0 : i32, i32
  }
  func.func @transform_1(%arg0: i32) -> (i32, i32) {
    %c0_i32 = arith.constant 0 : i32
    %c0_i32_0 = arith.constant 0 : i32
    return %c0_i32, %arg0 : i32, i32
  }
  func.func @transform_2(%arg0: i32) -> (i32, i32) {
    %c0_i32 = arith.constant 0 : i32
    %c0_i32_0 = arith.constant 0 : i32
    return %c0_i32, %arg0 : i32, i32
  }
  func.func @transform_3(%arg0: i32) -> (i32, i32) {
    %c0_i32 = arith.constant 0 : i32
    %c0_i32_0 = arith.constant 0 : i32
    return %c0_i32, %arg0 : i32, i32
  }
}

</mosaic_0001>

<bundles_post_ra>
// kernel: tpu_custom_call.1
= control target key start
LH: loop header
LB: loop body
LE: loop exit
PB: predicated region body
PF: predicated region fallthrough
CT: control target
= control target key end

     0   :  { %v29_v1 = vlaneseq  ;;  %v425_v2 = vmov 0.0|0.0   ;;  %v426_v3 = vmov 1966171168   ;;  %vm427_vm0 = vmmov 0   ;;  %s493_s0 = inlined_call_operand.vmem [shape: f32[6,9], index: 0, kind: input, shape index: {}]   ;;  %s494_s1 = inlined_call_operand.vmem [shape: f32[3,2], index: 1, kind: input, shape index: {}]   ;;  %s495_s2 = inlined_call_operand.vmem [shape: f32[3,2], index: 2, kind: input, shape index: {}]   ;;  %s496_s3 = inlined_call_operand.hbm [shape: f32[1,128], index: 3, kind: output, shape index: {}]  }
   0x1   :  { %v376_v0 = vld.sshfl [vmem:[%s494_s1] sm:$0x13 pattern:$0x75316420]  ;;  %389 = vmatprep.subr.bf16.mxu0 %v425_v2  ;;  %v27_v4 = vunpack.c.l.s4 %v426_v3  ;;  %v428_v6 = vmov 0.0  }
   0x2   :  { %v30_v5 = vshrl.u32 %v29_v1, 7  ;;  %386 = vmatprep.mubr.msk.f32.mxu0 %vm427_vm0, %v428_v6 }
   0x3   :  { %8 = vsyncpa [#allocation3], 0  ;;  %v25_v7 = vcombine.high %v376_v0, %v376_v0  ;;  %v28_v8 = vunpack.c.0.s8 %v27_v4  ;;  %v16_v13 = vld [vmem:[%s495_s2] sm:$0x7]  ;;  %vm272_vm1 = vcmask 1040384   ;;  %vm429_vm2 = vmmov 1  }
   0x4   :  { %v43_v10 = vsub.s32 0, %v30_v5  ;;  %vm391_vm3 = vmpackc.low %vm272_vm1, %vm429_vm2  ;;  %vm268_vm4 = vcmask 72704   ;;  %vm345_vm5 = vcmask 1045504   ;;  %s430_s16 = smov [#allocation2]  }
   0x5   :  { %v454_v9 = vsub.s32 %v28_v8, %v30_v5  ;;  %s368_s17 = sshll.u32 %s430_s16, 4  ;;  %s369_s17 = int_to_ptr.vmem [resolvable:$true] %s368_s17 }
   0x6   :  { %s405_s18 = scalar_lea.vmem %s369_s17, 32  ;;  %p406_p1 = scmp.lt.s32.totalorder %s369_s17, %s369_s17 }
   0x7   :  { %v32_v11 = vrot.slane %v376_v0, %v454_v9  ;;  %v39_v12 = vrot.slane %v25_v7, %v454_v9 }
   0x9   :  { %v40_v14 = vcombine.high %v32_v11, %v32_v11  ;;  %v44_v15 = vrot.slane %v32_v11, %v43_v10  ;;  %v48_v16 = vrot.slane %v39_v12, %v43_v10 }
   0xb   :  { %v52_v17 = vrot.slane %v40_v14, %v43_v10  ;;  %v56_v18 = vsub.f32 %v44_v15, %v16_v13  ;;  %v57_v19 = vsub.f32 %v48_v16, %v16_v13 }
   0xd   :  { %v58_v20 = vsub.f32 %v52_v17, %v16_v13  ;;  %v68_v21 = vrot.slane %v56_v18, %v454_v9  ;;  %v91_v22 = vrot.slane %v57_v19, %v454_v9 }
   0xf   :  { %v69_v23 = vcombine.high %v68_v21, %v68_v21  ;;  %v76_v24 = vrot.slane %v68_v21, %v454_v9  ;;  %v92_v25 = vcombine.high %v91_v22, %v91_v22  ;;  %v99_v26 = vrot.slane %v91_v22, %v454_v9 }
  0x10   :  { %v114_v27 = vrot.slane %v58_v20, %v454_v9 }
  0x11   :  { %v83_v28 = vrot.slane %v69_v23, %v454_v9  ;;  %v84_v29 = vcombine.high %v76_v24, %v76_v24  ;;  %v106_v30 = vrot.slane %v92_v25, %v454_v9  ;;  %v107_v31 = vcombine.high %v99_v26, %v99_v26 }
  0x12   :  { %v115_v32 = vcombine.high %v114_v27, %v114_v27  ;;  %v122_v33 = vrot.slane %v114_v27, %v454_v9  ;;  %v140_v34 = vmul.f32 0.31830987, %v76_v24  ;;  %v143_v35 = vmul.f32 0.31830987, %v99_v26 }
  0x13   :  { %v141_v36 = vmul.f32 0.31830987, %v83_v28  ;;  %v142_v37 = vmul.f32 0.31830987, %v84_v29  ;;  %v144_v38 = vmul.f32 0.31830987, %v106_v30 }
  0x14   :  { %v129_v39 = vrot.slane %v115_v32, %v454_v9  ;;  %v130_v40 = vcombine.high %v122_v33, %v122_v33  ;;  %v145_v41 = vmul.f32 0.31830987, %v107_v31  ;;  %v146_v42 = vmul.f32 0.31830987, %v122_v33 }
  0x15   :  { %v149_v43 = vadd.f32 0.5, %v140_v34  ;;  %v150_v44 = vadd.f32 0.5, %v141_v36  ;;  %v151_v45 = vadd.f32 0.5, %v142_v37  ;;  %v152_v46 = vadd.f32 0.5, %v143_v35 }
  0x16   :  { %v147_v47 = vmul.f32 0.31830987, %v129_v39  ;;  %v148_v48 = vmul.f32 0.31830987, %v130_v40  ;;  %v153_v49 = vadd.f32 0.5, %v144_v38  ;;  %v154_v50 = vadd.f32 0.5, %v145_v41 }
  0x17   :  { %v155_v51 = vadd.f32 0.5, %v146_v42  ;;  %v158_v52 = vfloor.f32 %v149_v43  ;;  %v159_v53 = vfloor.f32 %v150_v44  ;;  %v160_v54 = vfloor.f32 %v151_v45  ;;  %v194_v43 = vld [vmem:[%s493_s0] sm:$0x3f]  ;;  %s401_s0 = scalar_lea.vmem %s369_s17, 16 }
  0x18   :  { %v156_v55 = vadd.f32 0.5, %v147_v47  ;;  %v157_v56 = vadd.f32 0.5, %v148_v48  ;;  %v161_v57 = vfloor.f32 %v152_v46  ;;  %v162_v58 = vfloor.f32 %v153_v49  ;;  %p402_p0 = scmp.ne.s32.totalorder %s369_s17, %s401_s0  ;;  %p407_p2 = scmp.lt.s32.totalorder %s405_s18, %s401_s0 }
  0x19   :  { %v163_v59 = vfloor.f32 %v154_v50  ;;  %v164_v60 = vfloor.f32 %v155_v51  ;;  %v167_v61 = vmul.f32 3.1415927, %v158_v52  ;;  %v168_v62 = vmul.f32 3.1415927, %v159_v53 }
  0x1a   :  { %v165_v63 = vfloor.f32 %v156_v55  ;;  %v166_v0 = vfloor.f32 %v157_v56  ;;  %v169_v1 = vmul.f32 3.1415927, %v160_v54  ;;  %v170_v2 = vmul.f32 3.1415927, %v161_v57  ;;  %p408_p3 = por %p407_p2, %p406_p1 }
  0x1b   :  { %v171_v3 = vmul.f32 3.1415927, %v162_v58  ;;  %v172_v4 = vmul.f32 3.1415927, %v163_v59  ;;  %v173_v5 = vmul.f32 3.1415927, %v164_v60  ;;  %v176_v6 = vsub.f32 %v76_v24, %v167_v61 }
  0x1c   :  { %v174_v7 = vmul.f32 3.1415927, %v165_v63  ;;  %v175_v8 = vmul.f32 3.1415927, %v166_v0  ;;  %v177_v10 = vsub.f32 %v83_v28, %v168_v62  ;;  %v178_v11 = vsub.f32 %v84_v29, %v169_v1  ;;  %p409_p4 = pnand %p408_p3, %p402_p0 }
  0x1d   :  { %v179_v12 = vsub.f32 %v99_v26, %v170_v2  ;;  %v180_v13 = vsub.f32 %v106_v30, %v171_v3  ;;  %v181_v14 = vsub.f32 %v107_v31, %v172_v4  ;;  %v182_v15 = vsub.f32 %v122_v33, %v173_v5 }
  0x1e   :  { %v183_v16 = vsub.f32 %v129_v39, %v174_v7  ;;  %v184_v17 = vsub.f32 %v130_v40, %v175_v8  ;;  %v185_v18 = vmul.f32 %v176_v6, %v176_v6  ;;  %v186_v19 = vmul.f32 %v177_v10, %v177_v10 }
  0x1f   :  { %v187_v20 = vmul.f32 %v178_v11, %v178_v11  ;;  %v188_v21 = vmul.f32 %v179_v12, %v179_v12  ;;  %v189_v22 = vmul.f32 %v180_v13, %v180_v13  ;;  %v190_v23 = vmul.f32 %v181_v14, %v181_v14 }
  0x20   :  { %v191_v25 = vmul.f32 %v182_v15, %v182_v15  ;;  %v192_v27 = vmul.f32 %v183_v16, %v183_v16  ;;  %v193_v32 = vmul.f32 %v184_v17, %v184_v17  ;;  %v204_v24 = vcombine.low %v185_v18, %v186_v19 }
  0x21   :  { %v205_v34 = vcombine.low %v187_v20, %v188_v21  ;;  %v206_v35 = vcombine.low %v189_v22, %v190_v23 }
  0x22   :  { %v207_v28 = vcombine.low %v191_v25, %v192_v27  ;;  %v214_v26 = vrot.slane %v204_v24, %v454_v9  ;;  %v259_v33 = vrot.slane %v193_v32, %v454_v9 }
  0x23   :  { %v221_v29 = vrot.slane %v205_v34, %v454_v9  ;;  %v228_v30 = vrot.slane %v206_v35, %v454_v9 }
  0x24   :  { %v235_v31 = vrot.slane %v207_v28, %v454_v9  ;;  %v266_v40 = vrot.slane %v259_v33, %v454_v9 }
  0x25   :  { %v236_v36 = vcombine.low %v214_v26, %v221_v29 }
  0x26   :  { %v237_v37 = vcombine.low %v228_v30, %v235_v31 }
  0x27   :  { %v244_v38 = vrot.slane %v236_v36, %v454_v9 }
  0x28   :  { %v251_v39 = vrot.slane %v237_v37, %v454_v9 }
  0x2a   :  { %v252_v41 = vcombine.low %v244_v38, %v251_v39 }
  0x2c   :  { %v390_v42 = vpack.c.bf16 %v266_v40, %v252_v41 }
  0x2e   :  { %392 = vmatpush3.bf16.msk.msra.mxu0 %vm391_vm3, %v390_v42 }
  0x31   :  { %387 = vmatmul.mubr.msk.f32.vlgmr.msra.gmra.mrb[0].mxu0 %vm268_vm4, %v194_v43 }
 0x104   :  { %v341_v44 = vpop.f32.mrb[0].mxu0 }
 0x105   :  { %v346_v45 = vsel %vm345_vm5, %v341_v44, inf  ;;  %v388_v46 = vpop.f32.mrb[1].mxu0 }
 0x106   :  { %v347_v47 = vrot.slane %v346_v45, 4 }
 0x108   :  { %v348_v48 = vmin.f32 %v346_v45, %v347_v47 }
 0x10a   :  { %v349_v49 = vrot.slane %v348_v48, 2 }
 0x10c   :  { %v350_v9 = vmin.f32 %v348_v48, %v349_v49 }
 0x10e   :  { %v351_v50 = vrot.slane %v350_v9, 1 }
 0x110   :  { %v352_v51 = vmin.f32 %v350_v9, %v351_v50 }
 0x112   :  { %v353_v52 = vmul.f32 0.33333334, %v352_v51 }
 0x114   :  { %399 = vrsqrt.f32 %v353_v52  ;;  %vm356_vm6 = vcmp.eq.f32.partialorder %v353_v52, inf  ;;  %v359_v55 = vand.u32 2147483648, %v353_v52  ;;  %vm358_vm7 = vcmp.eq.f32.partialorder %v353_v52, 0.0 }
 0x11e   :  { %v400_v53 = vpop.eup %399 }
 0x11f   :  { %v355_v54 = vmul.f32 %v400_v53, %v353_v52 }
 0x121   :  { %v357_v56 = vsel %vm356_vm6, %v353_v52, %v355_v54 }
 0x122   :  { %v360_v57 = vsel %vm358_vm7, %v359_v55, %v357_v56 }
 0x123   :  { %361 = vst [vmem:[#allocation2] sm:$0x1] %v360_v57 }
 0x124   :  { %412 = shalt.err (!%p409_p4)
}
 0x125   :  { %s413_s21 = scalar_lea.hbm %s496_s3, 16 }
 0x126   :  { %p414_p5 = scmp.ne.s32.totalorder %s496_s3, %s413_s21  ;;  %p417_p6 = scmp.lt.u32.totalorder %s413_s21, %s496_s3 }
 0x128   :  { %p419_p7 = pnand %p417_p6, %p414_p5 }
 0x12a   :  { %422 = shalt.err (!%p419_p7)
}
 0x12b   :  { %371 = dma.vmem_to_hbm [thread:$0]  %s369_s17, 16, %s496_s3, [#allocation3]  }
 0x12c   :  { %423 = dma.done.wait [#allocation3], 16  }
 0x12d   :  { %424 = vsyncadd [#allocation3], 4294967280 }
 0x12e   :  { %375 = vsyncpa [#allocation3], 1 }

</bundles_post_ra>
